<compile_context>
chip_gen: v5e
topology: v5e:2x2
jax: 0.10.0
libtpu: 0.0.40
codegen_flags: <defaults>
</compile_context>

<pallas_src>
import functools

import jax
import jax.numpy as jnp
from jax import lax
from jax.experimental import pallas as pl
from jax.experimental.pallas import tpu as pltpu

EPS = 1e-12            # RMSNorm eps from the module
SUBLANE = 16           # covers bf16 sublane packing (f32 needs only 8)
_HEADROOM = 4 << 20    # VMEM slack left for Mosaic bookkeeping

_SQRT_HALF = 0.7071067811865476
_SQRT_2_OVER_PI = 0.7978845608028654


def _round_up(x, m):
    return ((x + m - 1) // m) * m


def _tpu_generation():
    try:
        kind = jax.devices()[0].device_kind.lower()
    except Exception:
        return "unknown"
    if "v7" in kind:
        return "v7x"
    if "v6" in kind:
        return "v6e"
    if "v5 lite" in kind or "v5e" in kind or "v5lite" in kind:
        return "v5e"
    return "unknown"


# Per-generation tiling / VMEM policy:
#   tm      row-tile target (>= weight-streaming roofline crossover)
#   tk_cap  inner-dim chunk cap
#   mult    lane multiple for Dp / tk (256 fills the 2x256x256 MXU on v6e/v7x)
#   vmem    vmem_limit_bytes (v7x has only 64 MiB per TensorCore)
#   res_cap max padded W1+W2 bytes for the weights-resident fast path
#   cores   TensorCores sharing the "parallel" grid axis
_GEN_CFG = {
    "v5e":     dict(tm=256,  tk_cap=2048, mult=128, vmem=96 << 20, res_cap=40 << 20, cores=1),
    "v6e":     dict(tm=1024, tk_cap=1024, mult=256, vmem=96 << 20, res_cap=40 << 20, cores=1),
    "v7x":     dict(tm=512,  tk_cap=256,  mult=256, vmem=40 << 20, res_cap=20 << 20, cores=2),
    "unknown": dict(tm=512,  tk_cap=1024, mult=128, vmem=64 << 20, res_cap=24 << 20, cores=1),
}


def _gelu(h, exact):
    if exact:
        # Exact (erf) GELU: matches torch.nn.GELU() bit-for-bit semantics.
        return 0.5 * h * (1.0 + lax.erf(h * jnp.float32(_SQRT_HALF)))
    # tanh approximation rides the (otherwise idle) EUP slot instead of a long
    # erf VALU polynomial.
    inner = jnp.float32(_SQRT_2_OVER_PI) * (h + jnp.float32(0.044715) * h * h * h)
    return 0.5 * h * (1.0 + jnp.tanh(inner))


# ----------------------------------------------------------------------------
# Kernels
# ----------------------------------------------------------------------------
def _ffn_resident_kernel(x_ref, w1_ref, b1_ref, w2_ref, b2_ref, g_ref, o_ref, *,
                         d_true, exact_gelu):
    """Weights stay resident in VMEM (constant block index); only x/out stream."""
    x = x_ref[...]
    h = jnp.dot(x, w1_ref[...], preferred_element_type=jnp.float32) + b1_ref[...]
    h = _gelu(h, exact_gelu)
    y = jnp.dot(h.astype(w2_ref.dtype), w2_ref[...],
                preferred_element_type=jnp.float32)
    y = y + b2_ref[...] + x.astype(jnp.float32)
    # RMSNorm over the TRUE feature width; padded lanes of y are exactly zero.
    var = jnp.sum(y * y, axis=-1, keepdims=True) * jnp.float32(1.0 / d_true)
    y = y * lax.rsqrt(var + jnp.float32(EPS))
    o_ref[...] = (g_ref[...] * y).astype(o_ref.dtype)


def _ffn_stream_kernel(x_ref, w1_ref, b1_ref, w2_ref, b2_ref, g_ref, o_ref,
                       *scratch, d_true, exact_gelu):
    """Streams (Dp, tk) / (tk, Dp) weight slabs; accumulates the output row tile."""
    # When the output dtype is float32 the output tile itself is the f32
    # accumulator (its block index is constant across k) -> no VMEM scratch.
    acc_ref = scratch[0] if scratch else o_ref
    k = pl.program_id(1)

    @pl.when(k == 0)
    def _init():
        acc_ref[...] = jnp.zeros_like(acc_ref)

    h = jnp.dot(x_ref[...], w1_ref[...], preferred_element_type=jnp.float32)
    h = _gelu(h + b1_ref[...], exact_gelu)
    acc_ref[...] += jnp.dot(h.astype(w2_ref.dtype), w2_ref[...],
                            preferred_element_type=jnp.float32)

    @pl.when(k == pl.num_programs(1) - 1)
    def _finalize():
        y = acc_ref[...] + b2_ref[...] + x_ref[...].astype(jnp.float32)
        var = jnp.sum(y * y, axis=-1, keepdims=True) * jnp.float32(1.0 / d_true)
        y = y * lax.rsqrt(var + jnp.float32(EPS))
        o_ref[...] = (g_ref[...] * y).astype(o_ref.dtype)


# ----------------------------------------------------------------------------
# Parameter preparation (padding done ONCE, not per forward call)
# ----------------------------------------------------------------------------
def _derive_tk(Dp, inner, cfg, w_itemsize):
    """Largest lane-aligned inner-dim chunk whose per-step working set
    (double-buffered W1/W2 slabs + double-buffered x/out tiles + f32 acc
    + hidden temporaries) fits the per-generation VMEM budget."""
    tm = cfg["tm"]
    budget = cfg["vmem"] - _HEADROOM
    fixed = 4 * tm * Dp                               # f32 accumulator scratch
    fixed += 2 * tm * Dp * 2 * w_itemsize             # double-buffered x + out tiles
    per_tk = 4 * Dp * w_itemsize + 6 * tm             # dbl-buffered W1+W2 slabs + temps
    tk = (budget - fixed) // per_tk
    tk = min(tk, cfg["tk_cap"], _round_up(inner, cfg["mult"]))
    tk = max(cfg["mult"], (tk // cfg["mult"]) * cfg["mult"])
    return int(tk)


def prepare_ffn_params(w1, b1, w2, b2, gamma, *, tk=None, cfg=None):
    """Pad FeedForward parameters once at setup time.

    w1: [d_model, inner]   (pre-transposed vs torch nn.Linear weight)
    w2: [inner, d_model]
    Pass bf16 w1/w2 for the production MXU path; biases/gamma stay f32.
    Zero-padding inner is exact: GELU(0) = 0 and padded W2 rows are zero.
    """
    cfg = dict(cfg or _GEN_CFG[_tpu_generation()])
    D, inner = w1.shape
    Dp = _round_up(D, cfg["mult"])

    if tk is None:
        tk = _derive_tk(Dp, inner, cfg, w1.dtype.itemsize)
    tk = max(128, _round_up(int(tk), 128))
    innerP = _round_up(inner, tk)

    w1p = jnp.pad(w1, ((0, Dp - D), (0, innerP - inner))) \
        if (Dp != D or innerP != inner) else w1
    w2p = jnp.pad(w2, ((0, innerP - inner), (0, Dp - D))) \
        if (Dp != D or innerP != inner) else w2
    b1p = jnp.pad(b1, (0, innerP - inner)) if innerP != inner else b1
    b2p = jnp.pad(b2, (0, Dp - D)) if Dp != D else b2
    gp = jnp.pad(gamma, (0, Dp - D)) if Dp != D else gamma

    return dict(
        w1=w1p, w2=w2p,
        b1=b1p.astype(jnp.float32).reshape(1, innerP),
        b2=b2p.astype(jnp.float32).reshape(1, Dp),
        gamma=gp.astype(jnp.float32).reshape(1, Dp),
        d_true=D, Dp=Dp, innerP=innerP, tk=tk, cfg=cfg,
    )


# ----------------------------------------------------------------------------
# Forward wrapper
# ----------------------------------------------------------------------------
def feed_forward(x, params, *, exact_gelu=False, force_streaming=False, tm=None):
    """x: [B, S, d_model]; params: output of prepare_ffn_params()."""
    cfg = params["cfg"]
    Dp, innerP, tk, D = params["Dp"], params["innerP"], params["tk"], params["d_true"]
    w1p, w2p = params["w1"], params["w2"]
    b1_2d, b2_2d, g_2d = params["b1"], params["b2"], params["gamma"]

    B, S, _ = x.shape
    M = B * S

    # --- row tile -------------------------------------------------------
    if tm is None:
        tm = cfg["tm"]
    tm = min(tm, _round_up(M, SUBLANE))
    if cfg["cores"] >= 2 and M > SUBLANE:
        # keep >=2 row tiles so both v7x TensorCores get work
        tm = min(tm, max(SUBLANE, _round_up(-(-M // 2), SUBLANE)))
    tm = _round_up(int(tm), SUBLANE)
    Mp = _round_up(M, tm)

    x2 = x.reshape(M, D)
    if Mp != M or Dp != D:
        x2 = jnp.pad(x2, ((0, Mp - M), (0, Dp - D)))

    # --- resident vs streaming decision ----------------------------------
    w_bytes = (w1p.size + w2p.size) * w1p.dtype.itemsize
    x_bytes = x2.dtype.itemsize
    io_tile_bytes = 2 * tm * Dp * 2 * x_bytes            # dbl-buffered x + out tiles
    hid_tile_bytes = tm * innerP * 4 + tm * Dp * 4       # f32 hidden + f32 y temps
    use_resident = (not force_streaming
                    and w_bytes <= cfg["res_cap"]
                    and 2 * w_bytes + io_tile_bytes + hid_tile_bytes + _HEADROOM
                    <= cfg["vmem"])

    acc_in_out = (x.dtype == jnp.float32)   # o_ref doubles as the f32 accumulator

    if use_resident:
        grid = (Mp // tm,)
        kernel = functools.partial(_ffn_resident_kernel, d_true=D,
                                   exact_gelu=exact_gelu)
        in_specs = [
            pl.BlockSpec((tm, Dp), lambda i: (i, 0)),       # x row tile (streamed)
            pl.BlockSpec((Dp, innerP), lambda i: (0, 0)),   # W1 (resident)
            pl.BlockSpec((1, innerP), lambda i: (0, 0)),    # b1
            pl.BlockSpec((innerP, Dp), lambda i: (0, 0)),   # W2 (resident)
            pl.BlockSpec((1, Dp), lambda i: (0, 0)),        # b2
            pl.BlockSpec((1, Dp), lambda i: (0, 0)),        # RMSNorm gamma
        ]
        out_specs = pl.BlockSpec((tm, Dp), lambda i: (i, 0))
        scratch = []
        sem = ("parallel",)
        hbm_bytes = w_bytes + Mp * Dp * 2 * x_bytes
    else:
        grid = (Mp // tm, innerP // tk)
        kernel = functools.partial(_ffn_stream_kernel, d_true=D,
                                   exact_gelu=exact_gelu)
        in_specs = [
            pl.BlockSpec((tm, Dp), lambda i, k: (i, 0)),    # x row tile
            pl.BlockSpec((Dp, tk), lambda i, k: (0, k)),    # W1 slab
            pl.BlockSpec((1, tk), lambda i, k: (0, k)),     # b1 chunk
            pl.BlockSpec((tk, Dp), lambda i, k: (k, 0)),    # W2 slab
            pl.BlockSpec((1, Dp), lambda i, k: (0, 0)),     # b2
            pl.BlockSpec((1, Dp), lambda i, k: (0, 0)),     # RMSNorm gamma
        ]
        out_specs = pl.BlockSpec((tm, Dp), lambda i, k: (i, 0))
        scratch = [] if acc_in_out else [pltpu.VMEM((tm, Dp), jnp.float32)]
        sem = ("parallel", "arbitrary")
        # Weights are re-read from HBM once per row tile.
        hbm_bytes = (Mp // tm) * w_bytes + Mp * Dp * 2 * x_bytes

    cost = pl.CostEstimate(
        flops=4 * Mp * Dp * innerP,
        transcendentals=Mp * innerP,
        bytes_accessed=int(hbm_bytes),
    )

    out = pl.pallas_call(
        kernel,
        out_shape=jax.ShapeDtypeStruct((Mp, Dp), x.dtype),
        grid_spec=pltpu.PrefetchScalarGridSpec(
            num_scalar_prefetch=0,
            grid=grid,
            in_specs=in_specs,
            out_specs=out_specs,
            scratch_shapes=scratch,
        ),
        compiler_params=pltpu.CompilerParams(
            dimension_semantics=sem,
            vmem_limit_bytes=cfg["vmem"],
        ),
        cost_estimate=cost,
    )(x2, w1p, b1_2d, w2p, b2_2d, g_2d)

    return out[:M, :D].reshape(B, S, D)


# ----------------------------------------------------------------------------
# Pure-JAX reference
# ----------------------------------------------------------------------------
def reference(x, w1, b1, w2, b2, gamma, *, approximate=False):
    p = lax.Precision.HIGHEST
    h = jnp.dot(x, w1, precision=p) + b1
    h = jax.nn.gelu(h, approximate=approximate)
    h = jnp.dot(h, w2, precision=p) + b2
    y = h + x
    var = jnp.mean(y * y, axis=-1, keepdims=True)
    return gamma * (y * lax.rsqrt(var + EPS))


if __name__ == "__main__":
    batch, seq, d_model, inner = 2, 8, 32, 64

    key = jax.random.PRNGKey(0)
    kx, k1, k2, k3, k4, k5, k6 = jax.random.split(key, 7)

    x = jax.random.normal(kx, (batch, seq, d_model), dtype=jnp.float32)
    # Deterministic synthetic parameters (shapes from nn.Linear / RMSNorm).
    # Weights stored pre-transposed vs PyTorch: (in_features, out_features).
    w1 = jax.random.normal(k1, (d_model, inner), dtype=jnp.float32) * 0.05
    b1 = jax.random.normal(k2, (inner,), dtype=jnp.float32) * 0.01
    w2 = jax.random.normal(k3, (inner, d_model), dtype=jnp.float32) * 0.05
    b2 = jax.random.normal(k4, (d_model,), dtype=jnp.float32) * 0.01
    gamma = jnp.ones((d_model,), dtype=jnp.float32)   # RMSNorm weight init = 1

    ref_exact = reference(x, w1, b1, w2, b2, gamma, approximate=False)
    ref_tanh = reference(x, w1, b1, w2, b2, gamma, approximate=True)

    # 1) f32, exact GELU, weights-resident fast path.
    params = prepare_ffn_params(w1, b1, w2, b2, gamma)
    out = jax.block_until_ready(feed_forward(x, params, exact_gelu=True))
    assert out.shape == (batch, seq, d_model)
    assert jnp.allclose(out, ref_exact, atol=1e-4, rtol=1e-4), "f32 resident/exact mismatch"

    # 2) f32, default tanh-approx GELU (production EUP path).
    out = jax.block_until_ready(feed_forward(x, params))
    assert jnp.allclose(out, ref_tanh, atol=2e-3, rtol=2e-3), "f32 tanh mismatch"

    # 3) f32, forced streaming path (accumulator lives in o_ref, no scratch).
    params_s = prepare_ffn_params(w1, b1, w2, b2, gamma, tk=128)
    out = jax.block_until_ready(
        feed_forward(x, params_s, exact_gelu=True, force_streaming=True))
    assert jnp.allclose(out, ref_exact, atol=1e-4, rtol=1e-4), "f32 streaming mismatch"

    # 4) multi-chunk streaming (inner=256, tk=128 -> 2 k-steps): init/accumulate/finalize.
    inner2 = 256
    w1b = jax.random.normal(k5, (d_model, inner2), dtype=jnp.float32) * 0.05
    w2b = jax.random.normal(k6, (inner2, d_model), dtype=jnp.float32) * 0.05
    b1b = jnp.zeros((inner2,), jnp.float32)
    ref_b = reference(x, w1b, b1b, w2b, b2, gamma, approximate=False)
    params_b = prepare_ffn_params(w1b, b1b, w2b, b2, gamma, tk=128)
    out = jax.block_until_ready(
        feed_forward(x, params_b, exact_gelu=True, force_streaming=True))
    assert jnp.allclose(out, ref_b, atol=1e-4, rtol=1e-4), "multi-chunk streaming mismatch"

    # 5) bf16 production path, resident (bf16 x/W on MXU, f32 math elsewhere).
    params_bf = prepare_ffn_params(w1.astype(jnp.bfloat16), b1,
                                   w2.astype(jnp.bfloat16), b2, gamma)
    out = jax.block_until_ready(feed_forward(x.astype(jnp.bfloat16), params_bf))
    assert jnp.allclose(out.astype(jnp.float32), ref_exact, atol=0.1, rtol=0.1), \
        "bf16 resident mismatch"

    # 6) bf16, forced streaming (exercises the f32 VMEM accumulator scratch).
    params_bf_s = prepare_ffn_params(w1.astype(jnp.bfloat16), b1,
                                     w2.astype(jnp.bfloat16), b2, gamma, tk=128)
    out = jax.block_until_ready(
        feed_forward(x.astype(jnp.bfloat16), params_bf_s, force_streaming=True))
    assert jnp.allclose(out.astype(jnp.float32), ref_exact, atol=0.1, rtol=0.1), \
        "bf16 streaming mismatch"

    print("KERNEL_OK")
</pallas_src>

<mosaic_0001>
module attributes {stable_mosaic.version = 11 : i64} {
  func.func @_ffn_resident_kernel(%arg0: i32, %arg1: memref<16x128xf32, #tpu.memory_space<vmem>>, %arg2: memref<128x128xf32, #tpu.memory_space<vmem>>, %arg3: memref<1x128xf32, #tpu.memory_space<vmem>>, %arg4: memref<128x128xf32, #tpu.memory_space<vmem>>, %arg5: memref<1x128xf32, #tpu.memory_space<vmem>>, %arg6: memref<1x128xf32, #tpu.memory_space<vmem>>, %arg7: memref<16x128xf32, #tpu.memory_space<vmem>>) attributes {dimension_semantics = [#tpu.dimension_semantics<parallel>], iteration_bounds = array<i64: 1>, scalar_prefetch = 0 : i64, scratch_operands = 0 : i64, tpu.core_type = #tpu.core_type<tc>, window_params = [{transform_indices = @transform_0, window_bounds = array<i64: 16, 128>}, {pipeline_mode = #tpu.pipeline_mode<synchronous>, transform_indices = @transform_1, window_bounds = array<i64: 128, 128>}, {pipeline_mode = #tpu.pipeline_mode<synchronous>, transform_indices = @transform_2, window_bounds = array<i64: 1, 128>}, {pipeline_mode = #tpu.pipeline_mode<synchronous>, transform_indices = @transform_3, window_bounds = array<i64: 128, 128>}, {pipeline_mode = #tpu.pipeline_mode<synchronous>, transform_indices = @transform_4, window_bounds = array<i64: 1, 128>}, {pipeline_mode = #tpu.pipeline_mode<synchronous>, transform_indices = @transform_5, window_bounds = array<i64: 1, 128>}, {transform_indices = @transform_6, window_bounds = array<i64: 16, 128>}]} {
    %c0 = arith.constant 0 : index
    %c0_0 = arith.constant 0 : index
    %0 = vector.load %arg1[%c0, %c0_0] : memref<16x128xf32, #tpu.memory_space<vmem>>, vector<16x128xf32>
    %c0_1 = arith.constant 0 : index
    %c0_2 = arith.constant 0 : index
    %1 = vector.load %arg2[%c0_1, %c0_2] : memref<128x128xf32, #tpu.memory_space<vmem>>, vector<128x128xf32>
    %cst = arith.constant dense<0.000000e+00> : vector<16x128xf32>
    %2 = tpu.matmul %0, %1, %cst {dimension_numbers = #tpu.dot_dimension_numbers<[1], [0], [0], [1], [0, 0, 1, 1], [], []>} : vector<16x128xf32>, vector<128x128xf32>, vector<16x128xf32> -> vector<16x128xf32>
    %c0_3 = arith.constant 0 : index
    %c0_4 = arith.constant 0 : index
    %3 = vector.load %arg3[%c0_3, %c0_4] : memref<1x128xf32, #tpu.memory_space<vmem>>, vector<1x128xf32>
    %4 = vector.broadcast %3 : vector<1x128xf32> to vector<16x128xf32>
    %5 = arith.addf %2, %4 : vector<16x128xf32>
    %cst_5 = arith.constant 5.000000e-01 : f32
    %6 = vector.broadcast %cst_5 : f32 to vector<16x128xf32>
    %7 = arith.mulf %6, %5 : vector<16x128xf32>
    %cst_6 = arith.constant 0.707106769 : f32
    %8 = vector.broadcast %cst_6 : f32 to vector<16x128xf32>
    %9 = arith.mulf %5, %8 : vector<16x128xf32>
    %10 = math.erf %9 : vector<16x128xf32>
    %cst_7 = arith.constant 1.000000e+00 : f32
    %11 = vector.broadcast %cst_7 : f32 to vector<16x128xf32>
    %12 = arith.addf %11, %10 : vector<16x128xf32>
    %13 = arith.mulf %7, %12 : vector<16x128xf32>
    %c0_8 = arith.constant 0 : index
    %c0_9 = arith.constant 0 : index
    %14 = vector.load %arg4[%c0_8, %c0_9] : memref<128x128xf32, #tpu.memory_space<vmem>>, vector<128x128xf32>
    %cst_10 = arith.constant dense<0.000000e+00> : vector<16x128xf32>
    %15 = tpu.matmul %13, %14, %cst_10 {dimension_numbers = #tpu.dot_dimension_numbers<[1], [0], [0], [1], [0, 0, 1, 1], [], []>} : vector<16x128xf32>, vector<128x128xf32>, vector<16x128xf32> -> vector<16x128xf32>
    %c0_11 = arith.constant 0 : index
    %c0_12 = arith.constant 0 : index
    %16 = vector.load %arg5[%c0_11, %c0_12] : memref<1x128xf32, #tpu.memory_space<vmem>>, vector<1x128xf32>
    %17 = vector.broadcast %16 : vector<1x128xf32> to vector<16x128xf32>
    %18 = arith.addf %15, %17 : vector<16x128xf32>
    %19 = arith.addf %18, %0 : vector<16x128xf32>
    %20 = arith.mulf %19, %19 : vector<16x128xf32>
    %cst_13 = arith.constant dense<0.000000e+00> : vector<16xf32>
    %21 = vector.multi_reduction <add>, %20, %cst_13 [1] : vector<16x128xf32> to vector<16xf32>
    %22 = vector.shape_cast %21 : vector<16xf32> to vector<16x1xf32>
    %cst_14 = arith.constant 3.125000e-02 : f32
    %23 = vector.broadcast %cst_14 : f32 to vector<16x1xf32>
    %24 = arith.mulf %22, %23 : vector<16x1xf32>
    %cst_15 = arith.constant 9.99999996E-13 : f32
    %25 = vector.broadcast %cst_15 : f32 to vector<16x1xf32>
    %26 = arith.addf %24, %25 : vector<16x1xf32>
    %27 = math.rsqrt %26 : vector<16x1xf32>
    %28 = vector.broadcast %27 : vector<16x1xf32> to vector<16x128xf32>
    %29 = arith.mulf %19, %28 : vector<16x128xf32>
    %c0_16 = arith.constant 0 : index
    %c0_17 = arith.constant 0 : index
    %30 = vector.load %arg6[%c0_16, %c0_17] : memref<1x128xf32, #tpu.memory_space<vmem>>, vector<1x128xf32>
    %31 = vector.broadcast %30 : vector<1x128xf32> to vector<16x128xf32>
    %32 = arith.mulf %31, %29 : vector<16x128xf32>
    %c0_18 = arith.constant 0 : index
    %c0_19 = arith.constant 0 : index
    %33 = vector.load %arg7[%c0_18, %c0_19] : memref<16x128xf32, #tpu.memory_space<vmem>>, vector<16x128xf32>
    tpu.vector_store %arg7[%c0_18, %c0_19], %32 {strides = array<i32>} : memref<16x128xf32, #tpu.memory_space<vmem>>, vector<16x128xf32>,
    return
  }
  func.func @transform_0(%arg0: i32) -> (i32, i32) {
    %c0_i32 = arith.constant 0 : i32
    %c0_i32_0 = arith.constant 0 : i32
    return %arg0, %c0_i32 : i32, i32
  }
  func.func @transform_1(%arg0: i32) -> (i32, i32) {
    %c0_i32 = arith.constant 0 : i32
    %c0_i32_0 = arith.constant 0 : i32
    %c0_i32_1 = arith.constant 0 : i32
    return %c0_i32, %c0_i32_0 : i32, i32
  }
  func.func @transform_2(%arg0: i32) -> (i32, i32) {
    %c0_i32 = arith.constant 0 : i32
    %c0_i32_0 = arith.constant 0 : i32
    %c0_i32_1 = arith.constant 0 : i32
    return %c0_i32, %c0_i32_0 : i32, i32
  }
  func.func @transform_3(%arg0: i32) -> (i32, i32) {
    %c0_i32 = arith.constant 0 : i32
    %c0_i32_0 = arith.constant 0 : i32
    %c0_i32_1 = arith.constant 0 : i32
    return %c0_i32, %c0_i32_0 : i32, i32
  }
  func.func @transform_4(%arg0: i32) -> (i32, i32) {
    %c0_i32 = arith.constant 0 : i32
    %c0_i32_0 = arith.constant 0 : i32
    %c0_i32_1 = arith.constant 0 : i32
    return %c0_i32, %c0_i32_0 : i32, i32
  }
  func.func @transform_5(%arg0: i32) -> (i32, i32) {
    %c0_i32 = arith.constant 0 : i32
    %c0_i32_0 = arith.constant 0 : i32
    %c0_i32_1 = arith.constant 0 : i32
    return %c0_i32, %c0_i32_0 : i32, i32
  }
  func.func @transform_6(%arg0: i32) -> (i32, i32) {
    %c0_i32 = arith.constant 0 : i32
    %c0_i32_0 = arith.constant 0 : i32
    return %arg0, %c0_i32 : i32, i32
  }
}

</mosaic_0001>

<bundles_post_ra>
// kernel: tpu_custom_call.1
= control target key start
LH: loop header
LB: loop body
LE: loop exit
PB: predicated region body
PF: predicated region fallthrough
CT: control target
= control target key end

     0   :  { %11 = vsyncpa [#allocation3], 0  ;;  %s574_s0 = inlined_call_operand.hbm [shape: f32[16,128], index: 0, kind: input, shape index: {}]   ;;  %s575_s1 = inlined_call_operand.hbm [shape: f32[128,128], index: 1, kind: input, shape index: {}]   ;;  %s576_s2 = inlined_call_operand.vmem [shape: f32[1,128], index: 2, kind: input, shape index: {}]   ;;  %s577_s3 = inlined_call_operand.hbm [shape: f32[128,128], index: 3, kind: input, shape index: {}]   ;;  %s578_s4 = inlined_call_operand.vmem [shape: f32[1,128], index: 4, kind: input, shape index: {}]   ;;  %s579_s5 = inlined_call_operand.vmem [shape: f32[1,128], index: 5, kind: input, shape index: {}]   ;;  %s580_s6 = inlined_call_operand.hbm [shape: f32[16,128], index: 6, kind: output, shape index: {}]  }
   0x1   :  { %12 = vsyncpa [#allocation6], 0 }
   0x2   :  { %13 = vsyncpa [#allocation4], 0  ;;  %s31_s23 = sshll.u32 %s575_s1, 4  ;;  %s462_s24 = smov [#allocation5]   ;;  %s32_s23 = int_to_ptr.hbm [resolvable:$true] %s31_s23 }
   0x3   :  { %s33_s25 = sshll.u32 %s462_s24, 4  ;;  %s18_s28 = sshll.u32 %s574_s0, 4  ;;  %s34_s25 = int_to_ptr.vmem [resolvable:$true] %s33_s25  ;;  %s19_s28 = int_to_ptr.hbm [resolvable:$true] %s18_s28 }
   0x4   :  { %s463_s29 = smov 128   ;;  %s464_s30 = smov 8  }
   0x5   :  { %39 = dma.hbm_to_vmem [thread:$0]  %s32_s23, 2048, %s34_s25, [#allocation6], %s463_s29, %s463_s29, %s464_s30  }
   0x6   :  { %s465_s7 = smov [#allocation2]   ;;  %s46_s1 = sshll.u32 %s577_s3, 4  ;;  %s47_s1 = int_to_ptr.hbm [resolvable:$true] %s46_s1 }
   0x7   :  { %s20_s8 = sshll.u32 %s465_s7, 4  ;;  %s466_s0 = smov [#allocation7]   ;;  %s21_s8 = int_to_ptr.vmem [resolvable:$true] %s20_s8 }
   0x8   :  { %26 = dma.hbm_to_vmem [thread:$0]  %s19_s28, 256, %s21_s8, [#allocation3], %s463_s29, %s463_s29, %s464_s30  }
   0x9   :  { %s48_s11 = sshll.u32 %s466_s0, 4  ;;  %s49_s11 = int_to_ptr.vmem [resolvable:$true] %s48_s11 }
   0xa   :  { %54 = dma.hbm_to_vmem [thread:$0]  %s47_s1, 2048, %s49_s11, [#allocation6], %s463_s29, %s463_s29, %s464_s30  }
   0xb   :  { %456 = dma.done.wait [#allocation3], 256  }
   0xc   :  { %457 = vsyncadd [#allocation3], 4294967040 }
   0xd   :  { %458 = dma.done.wait [#allocation6], 4096  }
   0xe   :  { %459 = vsyncadd [#allocation6], 4294963200  ;;  %v88_v0 = vld [vmem:[#allocation5 + $0x78] sm:$0xff]  ;;  %v87_v1 = vld [vmem:[#allocation5 + $0x70] sm:$0xff]  ;;  %s467_s15 = smov [#allocation8]  }
   0xf   :  { %93 = vmatpush.msra.mxu0 %v88_v0  ;;  %311 = vmatpush.msra.mxu2 %v88_v0  ;;  %v86_v2 = vld [vmem:[#allocation5 + $0x68] sm:$0xff]  ;;  %v85_v3 = vld [vmem:[#allocation5 + $0x60] sm:$0xff]  ;;  %v84_v4 = vld [vmem:[#allocation5 + $0x58] sm:$0xff]  ;;  %s293_s16 = sshll.u32 %s467_s15, 4  ;;  %s294_s16 = int_to_ptr.vmem [resolvable:$true] %s293_s16 }
  0x10   :  { %v83_v5 = vld [vmem:[#allocation5 + $0x50] sm:$0xff]  ;;  %v82_v6 = vld [vmem:[#allocation5 + $0x48] sm:$0xff]  ;;  %v81_v7 = vld [vmem:[#allocation5 + $0x40] sm:$0xff] }
  0x11   :  { %94 = vmatpush.msra.mxu0 %v87_v1  ;;  %312 = vmatpush.msra.mxu2 %v87_v1  ;;  %v80_v8 = vld [vmem:[#allocation5 + $0x38] sm:$0xff]  ;;  %v79_v9 = vld [vmem:[#allocation5 + $0x30] sm:$0xff]  ;;  %v78_v10 = vld [vmem:[#allocation5 + $0x28] sm:$0xff] }
  0x12   :  { %v77_v11 = vld [vmem:[#allocation5 + $0x20] sm:$0xff]  ;;  %v76_v12 = vld [vmem:[#allocation5 + $0x18] sm:$0xff]  ;;  %v75_v13 = vld [vmem:[#allocation5 + $0x10] sm:$0xff] }
  0x13   :  { %95 = vmatpush.msra.mxu0 %v86_v2  ;;  %313 = vmatpush.msra.mxu2 %v86_v2  ;;  %v74_v14 = vld [vmem:[#allocation5 + $0x8] sm:$0xff]  ;;  %v73_v15 = vld [vmem:[#allocation5] sm:$0xff]  ;;  %v521_v16 = vld [vmem:[#allocation2] sm:$0xff] }
  0x14   :  { %v523_v17 = vld [vmem:[#allocation2 + $0x8] sm:$0xff]  ;;  %v218_v19 = vld [vmem:[#allocation7 + $0x70] sm:$0xff]  ;;  %v217_v20 = vld [vmem:[#allocation7 + $0x68] sm:$0xff] }
  0x15   :  { %96 = vmatpush.msra.mxu0 %v85_v3  ;;  %314 = vmatpush.msra.mxu2 %v85_v3  ;;  %v219_v18 = vld [vmem:[#allocation7 + $0x78] sm:$0xff]  ;;  %v216_v21 = vld [vmem:[#allocation7 + $0x60] sm:$0xff]  ;;  %v349_v22 = vld [vmem:[%s576_s2] ss:$0 sm:$0xff] }
  0x16   :  { %224 = vmatpush.msra.mxu1 %v219_v18  ;;  %327 = vmatpush.msra.mxu3 %v219_v18  ;;  %v215_v23 = vld [vmem:[#allocation7 + $0x58] sm:$0xff]  ;;  %v214_v25 = vld [vmem:[#allocation7 + $0x50] sm:$0xff]  ;;  %v213_v27 = vld [vmem:[#allocation7 + $0x48] sm:$0xff] }
  0x17   :  { %97 = vmatpush.msra.mxu0 %v84_v4  ;;  %315 = vmatpush.msra.mxu2 %v84_v4  ;;  %v212_v29 = vld [vmem:[#allocation7 + $0x40] sm:$0xff]  ;;  %v211_v30 = vld [vmem:[#allocation7 + $0x38] sm:$0xff]  ;;  %v210_v33 = vld [vmem:[#allocation7 + $0x30] sm:$0xff] }
  0x18   :  { %225 = vmatpush.msra.mxu1 %v218_v19  ;;  %328 = vmatpush.msra.mxu3 %v218_v19  ;;  %v209_v36 = vld [vmem:[#allocation7 + $0x28] sm:$0xff]  ;;  %v208_v39 = vld [vmem:[#allocation7 + $0x20] sm:$0xff]  ;;  %v207_v43 = vld [vmem:[#allocation7 + $0x18] sm:$0xff] }
  0x19   :  { %98 = vmatpush.msra.mxu0 %v83_v5  ;;  %316 = vmatpush.msra.mxu2 %v83_v5  ;;  %v206_v47 = vld [vmem:[#allocation7 + $0x10] sm:$0xff]  ;;  %v205_v52 = vld [vmem:[#allocation7 + $0x8] sm:$0xff]  ;;  %v204_v56 = vld [vmem:[#allocation7] sm:$0xff] }
  0x1a   :  { %226 = vmatpush.msra.mxu1 %v217_v20  ;;  %329 = vmatpush.msra.mxu3 %v217_v20 }
  0x1b   :  { %99 = vmatpush.msra.mxu0 %v82_v6  ;;  %317 = vmatpush.msra.mxu2 %v82_v6 }
  0x1c   :  { %227 = vmatpush.msra.mxu1 %v216_v21  ;;  %330 = vmatpush.msra.mxu3 %v216_v21 }
  0x1d   :  { %100 = vmatpush.msra.mxu0 %v81_v7  ;;  %318 = vmatpush.msra.mxu2 %v81_v7 }
  0x1e   :  { %228 = vmatpush.msra.mxu1 %v215_v23  ;;  %331 = vmatpush.msra.mxu3 %v215_v23 }
  0x1f   :  { %101 = vmatpush.msra.mxu0 %v80_v8  ;;  %319 = vmatpush.msra.mxu2 %v80_v8 }
  0x20   :  { %229 = vmatpush.msra.mxu1 %v214_v25  ;;  %332 = vmatpush.msra.mxu3 %v214_v25 }
  0x21   :  { %102 = vmatpush.msra.mxu0 %v79_v9  ;;  %320 = vmatpush.msra.mxu2 %v79_v9 }
  0x22   :  { %230 = vmatpush.msra.mxu1 %v213_v27  ;;  %333 = vmatpush.msra.mxu3 %v213_v27 }
  0x23   :  { %103 = vmatpush.msra.mxu0 %v78_v10  ;;  %321 = vmatpush.msra.mxu2 %v78_v10 }
  0x24   :  { %231 = vmatpush.msra.mxu1 %v212_v29  ;;  %334 = vmatpush.msra.mxu3 %v212_v29 }
  0x25   :  { %104 = vmatpush.msra.mxu0 %v77_v11  ;;  %322 = vmatpush.msra.mxu2 %v77_v11 }
  0x26   :  { %232 = vmatpush.msra.mxu1 %v211_v30  ;;  %335 = vmatpush.msra.mxu3 %v211_v30 }
  0x27   :  { %105 = vmatpush.msra.mxu0 %v76_v12  ;;  %323 = vmatpush.msra.mxu2 %v76_v12 }
  0x28   :  { %233 = vmatpush.msra.mxu1 %v210_v33  ;;  %336 = vmatpush.msra.mxu3 %v210_v33 }
  0x29   :  { %106 = vmatpush.msra.mxu0 %v75_v13  ;;  %324 = vmatpush.msra.mxu2 %v75_v13 }
  0x2a   :  { %234 = vmatpush.msra.mxu1 %v209_v36  ;;  %337 = vmatpush.msra.mxu3 %v209_v36 }
  0x2b   :  { %107 = vmatpush.msra.mxu0 %v74_v14  ;;  %325 = vmatpush.msra.mxu2 %v74_v14 }
  0x2c   :  { %235 = vmatpush.msra.mxu1 %v208_v39  ;;  %338 = vmatpush.msra.mxu3 %v208_v39 }
  0x2d   :  { %108 = vmatpush.msra.mxu0 %v73_v15  ;;  %326 = vmatpush.msra.mxu2 %v73_v15 }
  0x2e   :  { %109 = vmatmul.f32.vlgmr.msra.gmra.mxu0 %v521_v16  ;;  %112 = vmatmul.f32.vlgmr.msra.gmra.mxu2 %v523_v17 }
  0x2f   :  { %236 = vmatpush.msra.mxu1 %v207_v43  ;;  %339 = vmatpush.msra.mxu3 %v207_v43 }
  0x31   :  { %237 = vmatpush.msra.mxu1 %v206_v47  ;;  %340 = vmatpush.msra.mxu3 %v206_v47 }
  0x33   :  { %238 = vmatpush.msra.mxu1 %v205_v52  ;;  %341 = vmatpush.msra.mxu3 %v205_v52 }
  0x35   :  { %239 = vmatpush.msra.mxu1 %v204_v56  ;;  %342 = vmatpush.msra.mxu3 %v204_v56 }
  0xab   :  { %v110_v24 = vpop.f32.mrf.mxu0 }
  0xac   :  { %v530_v26 = vadd.f32 %v349_v22, %v110_v24 }
  0xae   :  { %v533_v28 = vmul.f32 0.70710677, %v530_v26 }
  0xb0   :  { %v120_v31 = vmul.f32 %v533_v28, %v533_v28 }
  0xb1   :  { %v113_v32 = vpop.f32.mrf.mxu2 }
  0xb2   :  { %v537_v34 = vmin.f32 %v120_v31, 16.0  ;;  %v539_v35 = vadd.f32 %v349_v22, %v113_v32 }
  0xb4   :  { %v122_v37 = vmul.f32 2.1237322e-06, %v537_v34  ;;  %v543_v38 = vmul.f32 0.70710677, %v539_v35  ;;  %v133_v40 = vmul.f32 3.8918573e-05, %v537_v34 }
  0xb6   :  { %v123_v41 = vadd.f32 0.00028619796, %v122_v37  ;;  %v160_v42 = vmul.f32 %v543_v38, %v543_v38  ;;  %v134_v44 = vadd.f32 0.001143296, %v133_v40 }
  0xb8   :  { %v124_v45 = vmul.f32 %v123_v41, %v537_v34  ;;  %v161_v46 = vmin.f32 %v160_v42, 16.0  ;;  %v135_v48 = vmul.f32 %v134_v44, %v537_v34 }
  0xba   :  { %v162_v49 = vmul.f32 2.1237322e-06, %v161_v46  ;;  %v173_v50 = vmul.f32 3.8918573e-05, %v161_v46  ;;  %v125_v51 = vadd.f32 0.0036580483, %v124_v45 }
  0xbb   :  { %v136_v53 = vadd.f32 0.014752088, %v135_v48 }
  0xbc   :  { %v163_v54 = vadd.f32 0.00028619796, %v162_v49  ;;  %v174_v55 = vadd.f32 0.001143296, %v173_v50  ;;  %v126_v60 = vmul.f32 %v125_v51, %v537_v34  ;;  %v116_v49 = vmul.f32 0.5, %v530_v26 }
  0xbd   :  { %v137_v57 = vmul.f32 %v136_v53, %v537_v34 }
  0xbe   :  { %v164_v58 = vmul.f32 %v163_v54, %v161_v46  ;;  %v175_v59 = vmul.f32 %v174_v55, %v161_v46  ;;  %v127_v2 = vadd.f32 0.05243302, %v126_v60  ;;  %v117_v55 = vmul.f32 0.5, %v539_v35 }
  0xbf   :  { %v138_v61 = vadd.f32 0.112945676, %v137_v57 }
  0xc0   :  { %v165_v62 = vadd.f32 0.0036580483, %v164_v58  ;;  %v176_v63 = vadd.f32 0.014752088, %v175_v59  ;;  %v128_v8 = vmul.f32 %v127_v2, %v537_v34  ;;  %v350_v58 = vld [vmem:[%s578_s4] ss:$0 sm:$0xff] }
  0xc1   :  { %v139_v0 = vmul.f32 %v138_v61, %v537_v34 }
  0xc2   :  { %v177_v1 = vmul.f32 %v176_v63, %v161_v46  ;;  %v166_v4 = vmul.f32 %v165_v62, %v161_v46  ;;  %v129_v13 = vadd.f32 0.18741608, %v128_v8 }
  0xc3   :  { %v140_v3 = vadd.f32 0.4994258, %v139_v0 }
  0xc4   :  { %v178_v5 = vadd.f32 0.112945676, %v177_v1  ;;  %v167_v10 = vadd.f32 0.05243302, %v166_v4  ;;  %v130_v19 = vmul.f32 %v129_v13, %v537_v34 }
  0xc5   :  { %v141_v6 = vmul.f32 %v140_v3, %v537_v34 }
  0xc6   :  { %v179_v7 = vmul.f32 %v178_v5, %v161_v46  ;;  %v168_v14 = vmul.f32 %v167_v10, %v161_v46  ;;  %v131_v23 = vadd.f32 1.1283791, %v130_v19 }
  0xc7   :  { %v142_v9 = vadd.f32 1.0, %v141_v6 }
  0xc8   :  { %v180_v11 = vadd.f32 0.4994258, %v179_v7  ;;  %v169_v20 = vadd.f32 0.18741608, %v168_v14  ;;  %v132_v33 = vmul.f32 %v131_v23, %v533_v28 }
  0xc9   :  { %352 = vrcp.f32 %v142_v9  ;;  %v154_v24 = vand.u32 2147483648, %v142_v9  ;;  %v152_v30 = vand.u32 2147483647, %v142_v9  ;;  %vm148_vm1 = vweird.f32 %v142_v9 }
  0xca   :  { %v181_v12 = vmul.f32 %v180_v11, %v161_v46  ;;  %v170_v27 = vmul.f32 %v169_v20, %v161_v46 }
  0xcb   :  { %v155_v36 = vor.u32 1.1754944e-38, %v154_v24  ;;  %vm153_vm3 = vcmp.eq.f32.partialorder %v152_v30, 8.507059e+37 }
  0xcc   :  { %v182_v15 = vadd.f32 1.0, %v181_v12  ;;  %v171_v39 = vadd.f32 1.1283791, %v170_v27 }
  0xce   :  { %354 = vrcp.f32 %v182_v15  ;;  %v194_v40 = vand.u32 2147483648, %v182_v15  ;;  %v192_v43 = vand.u32 2147483647, %v182_v15  ;;  %vm188_vm5 = vweird.f32 %v182_v15 }
  0xcf   :  { %v353_v18 = vpop.eup %352  ;;  %v172_v48 = vmul.f32 %v171_v39, %v543_v38 }
  0xd0   :  { %v144_v21 = vmul.f32 %v353_v18, %v142_v9  ;;  %vm149_vm0 = vweird.f32 %v353_v18  ;;  %v195_v47 = vor.u32 1.1754944e-38, %v194_v40  ;;  %vm193_vm7 = vcmp.eq.f32.partialorder %v192_v43, 8.507059e+37 }
  0xd1   :  { %vm150_vm2 = vmor %vm148_vm1, %vm149_vm0 }
  0xd2   :  { %v145_v22 = vsub.f32 1.0, %v144_v21 }
  0xd4   :  { %v355_v25 = vpop.eup %354  ;;  %v146_v29 = vmul.f32 %v353_v18, %v145_v22 }
  0xd5   :  { %v184_v31 = vmul.f32 %v355_v25, %v182_v15  ;;  %vm189_vm4 = vweird.f32 %v355_v25 }
  0xd6   :  { %v147_v32 = vadd.f32 %v353_v18, %v146_v29  ;;  %vm190_vm6 = vmor %vm188_vm5, %vm189_vm4 }
  0xd7   :  { %v185_v37 = vsub.f32 1.0, %v184_v31 }
  0xd8   :  { %v151_v34 = vsel %vm150_vm2, %v353_v18, %v147_v32 }
  0xd9   :  { %v156_v41 = vsel %vm153_vm3, %v155_v36, %v151_v34  ;;  %v186_v42 = vmul.f32 %v355_v25, %v185_v37 }
  0xda   :  { %v157_v44 = vmul.f32 %v156_v41, %v132_v33 }
  0xdb   :  { %v187_v45 = vadd.f32 %v355_v25, %v186_v42 }
  0xdc   :  { %v309_v46 = vclamps-f32 %v157_v44, 1.0 }
  0xdd   :  { %v191_v28 = vsel %vm190_vm6, %v355_v25, %v187_v45 }
  0xde   :  { %v200_v50 = vadd.f32 1.0, %v309_v46  ;;  %v196_v51 = vsel %vm193_vm7, %v195_v47, %v191_v28 }
  0xdf   :  { %v197_v52 = vmul.f32 %v196_v51, %v172_v48 }
  0xe0   :  { %v202_v53 = vmul.f32 %v200_v50, %v116_v49 }
  0xe1   :  { %v310_v54 = vclamps-f32 %v197_v52, 1.0 }
  0xe2   :  { %240 = vmatmul.f32.vlgmr.msra.gmra.mxu1 %v202_v53 }
  0xe3   :  { %v201_v56 = vadd.f32 1.0, %v310_v54 }
  0xe5   :  { %v203_v57 = vmul.f32 %v201_v56, %v117_v55 }
  0xe7   :  { %243 = vmatmul.f32.vlgmr.msra.gmra.mxu3 %v203_v57 }
 0x15f   :  { %v241_v38 = vpop.f32.mrf.mxu1 }
 0x160   :  { %v242_v59 = vadd.f32 %v350_v58, %v241_v38 }
 0x162   :  { %v247_v60 = vadd.f32 %v242_v59, %v521_v16 }
 0x164   :  { %v249_v26 = vmul.f32 %v247_v60, %v247_v60 }
 0x166   :  { %251 = vadd.xlane.f32.xlu0 %v249_v26 }
 0x16a   :  { %v244_v61 = vpop.f32.mrf.mxu3 }
 0x16b   :  { %v245_v62 = vadd.f32 %v350_v58, %v244_v61 }
 0x16d   :  { %v248_v63 = vadd.f32 %v245_v62, %v523_v17  ;;  %v351_v17 = vld [vmem:[%s579_s5] ss:$0 sm:$0xff]  ;;  %s295_s5 = sshll.u32 %s580_s6, 4  ;;  %s296_s5 = int_to_ptr.hbm [resolvable:$true] %s295_s5 }
 0x16f   :  { %v250_v0 = vmul.f32 %v248_v63, %v248_v63 }
 0x171   :  { %253 = vadd.xlane.f32.xlu0 %v250_v0 }
 0x1d9   :  { %v252_v35 = vpop.xlane.xlu0 %251 }
 0x1da   :  { %v255_v1 = vmul.f32 0.03125, %v252_v35 }
 0x1dc   :  { %v257_v2 = vadd.f32 1e-12, %v255_v1 }
 0x1de   :  { %356 = vrsqrt.f32 %v257_v2  ;;  %vm265_vm9 = vweird.f32 %v257_v2 }
 0x1e4   :  { %v357_v3 = vpop.eup %356  ;;  %v254_v4 = vpop.xlane.xlu0 %253 }
 0x1e5   :  { %v260_v5 = vmul.f32 %v357_v3, %v257_v2  ;;  %v256_v6 = vmul.f32 0.03125, %v254_v4  ;;  %vm266_vm8 = vweird.f32 %v357_v3 }
 0x1e6   :  { %vm267_vm10 = vmor %vm265_vm9, %vm266_vm8 }
 0x1e7   :  { %v261_v7 = vmul.f32 %v357_v3, %v260_v5  ;;  %v258_v8 = vadd.f32 1e-12, %v256_v6 }
 0x1e9   :  { %v262_v9 = vmul.f32 0.5, %v261_v7  ;;  %358 = vrsqrt.f32 %v258_v8  ;;  %vm275_vm12 = vweird.f32 %v258_v8 }
 0x1eb   :  { %v263_v16 = vsub.f32 1.5, %v262_v9 }
 0x1ed   :  { %v264_v10 = vmul.f32 %v357_v3, %v263_v16 }
 0x1ef   :  { %v359_v11 = vpop.eup %358  ;;  %v268_v12 = vsel %vm267_vm10, %v357_v3, %v264_v10 }
 0x1f0   :  { %v270_v13 = vmul.f32 %v359_v11, %v258_v8  ;;  %v279_v14 = vmul.f32 %v268_v12, %v247_v60  ;;  %vm276_vm11 = vweird.f32 %v359_v11 }
 0x1f1   :  { %vm277_vm13 = vmor %vm275_vm12, %vm276_vm11 }
 0x1f2   :  { %v271_v15 = vmul.f32 %v359_v11, %v270_v13  ;;  %v285_v18 = vmul.f32 %v351_v17, %v279_v14 }
 0x1f4   :  { %v272_v19 = vmul.f32 0.5, %v271_v15  ;;  %287 = vst [vmem:[#allocation8] sm:$0xff] %v285_v18 }
 0x1f6   :  { %v273_v20 = vsub.f32 1.5, %v272_v19 }
 0x1f8   :  { %v274_v21 = vmul.f32 %v359_v11, %v273_v20 }
 0x1fa   :  { %v278_v22 = vsel %vm277_vm13, %v359_v11, %v274_v21 }
 0x1fb   :  { %v280_v23 = vmul.f32 %v278_v22, %v248_v63 }
 0x1fd   :  { %v286_v24 = vmul.f32 %v351_v17, %v280_v23 }
 0x1ff   :  { %288 = vst [vmem:[#allocation8 + $0x8] sm:$0xff] %v286_v24 }
 0x200   :  { %301 = dma.vmem_to_hbm [thread:$0]  %s294_s16, 256, %s296_s5, [#allocation4], %s463_s29, %s463_s29, %s464_s30  }
 0x201   :  { %460 = dma.done.wait [#allocation4], 256  }
 0x202   :  { %461 = vsyncadd [#allocation4], 4294967040 }
 0x203   :  { %306 = vsyncpa [#allocation3], 1 }
 0x204   :  { %307 = vsyncpa [#allocation6], 1 }
 0x205   :  { %308 = vsyncpa [#allocation4], 1 }

</bundles_post_ra>
